<compile_context>
chip_gen: v6e
topology: v6e:2x2x1
jax: 0.10.0
libtpu: 0.0.40
codegen_flags: <defaults>
</compile_context>

<pallas_src>
import functools

import jax
import jax.numpy as jnp
from jax.experimental import pallas as pl
from jax.experimental.pallas import tpu as pltpu

_MIB = 1024 * 1024
_LANES = 128


def _ceil_div(a, b):
    return -(-a // b)


def _round_up(a, b):
    return _ceil_div(a, b) * b


def _focal_loss_kernel(logits_ref, meta_ref, psum_ref, *,
                       gamma, ignore_index, n_rows, tile_rows):
    i = pl.program_id(0)

    x = logits_ref[...]                                   # (TM, V) native dtype
    TM, V = x.shape

    # Per-row metadata from the lane-dense int32 slab.
    t_col = meta_ref[:, 0:1]                              # (TM, 1) int32 target id
    w_col = pltpu.bitcast(meta_ref[:, 1:2], jnp.float32)  # (TM, 1) f32 class weight

    # Row max + target-logit gather in the input's native dtype (bf16-friendly);
    # the one-hot is built from a hoisted (1, V) iota broadcast against (TM, 1).
    m_nat = jnp.max(x, axis=-1, keepdims=True)                       # (TM, 1)
    col = jax.lax.broadcasted_iota(jnp.int32, (1, V), 1)             # (1, V)
    onehot = col == t_col                                            # (TM, V) bool
    logit_t = jnp.sum(jnp.where(onehot, x, 0), axis=-1, keepdims=True)  # (TM, 1), exact

    # Upcast only for the exp / log-sum-exp path.
    xf = x.astype(jnp.float32)
    mf = m_nat.astype(jnp.float32)
    lse = mf + jnp.log(jnp.sum(jnp.exp(xf - mf), axis=-1, keepdims=True))  # (TM, 1)

    # F.cross_entropy(..., reduction='none', weight=w): ce = w[t] * (lse - logit[t]).
    ce = w_col * (lse - logit_t.astype(jnp.float32))                 # (TM, 1)

    # Validity: real (non-ignored) target AND row inside the ragged last tile.
    row = jax.lax.broadcasted_iota(jnp.int32, (TM, 1), 0)
    in_range = (i * tile_rows + row) < n_rows
    valid = jnp.logical_and(t_col != ignore_index, in_range)

    pt = jnp.exp(-ce)
    base = jnp.maximum(1.0 - pt, 0.0)

    g = float(gamma)
    if g == 0.0:
        # Static specialization: no pow at all (also avoids pow(0, 0) NaN).
        focal = ce
    elif g == float(int(g)) and 1 <= int(g) <= 4:
        f = base
        for _ in range(int(g) - 1):
            f = f * base
        focal = f * ce
    else:
        # Guard pow(0, g) (exp(g*log(0)) lowering) against NaN.
        focal = jnp.where(base > 0.0, jnp.power(base, g), 0.0) * ce

    # Select (NOT multiply) so garbage/NaN in out-of-range rows is dropped.
    focal = jnp.where(valid, focal, 0.0)

    # Lane-dense writeback: splat the tile's scalar sum across 128 lanes; the
    # wrapper reads lane 0 only.
    tile_sum = jnp.sum(focal, axis=(0, 1), keepdims=True)            # (1, 1)
    psum_ref[...] = jnp.broadcast_to(tile_sum.reshape(1, 1, 1), (1, 1, _LANES))


def _vmem_capacity_bytes():
    try:
        cap = getattr(pltpu.get_tpu_info(), "vmem_capacity_bytes", None)
        if cap:
            return int(cap)
    except Exception:
        pass
    return 64 * _MIB   # conservative (v7x-like) default if the query is unavailable


def _pick_tiling(n_rows, n_cols, itemsize, row_align, tile_rows=None):
    """Row-tile size, grid size and scoped-VMEM limit from a real VMEM budget."""
    vmem_cap = _vmem_capacity_bytes()
    if vmem_cap >= 100 * _MIB:      # v5e / v6e: 128 MiB physical VMEM -> big blocks
        budget = 64 * _MIB
    else:                           # v7x: 64 MiB per TensorCore -> stay lean
        budget = 24 * _MIB
    vmem_limit = int(max(32 * _MIB, min(budget + 32 * _MIB, vmem_cap - 16 * _MIB)))

    if tile_rows is None:
        # Per-row footprint: 2x double-buffered native logits row, ~3 f32-sized
        # (TM, V) temporaries (upcast / exp / select), 2x double-buffered meta row.
        per_row = n_cols * (2 * itemsize + 3 * 4) + 2 * _LANES * 4
        tm = budget // per_row
    else:
        tm = int(tile_rows)
    tm = max(row_align, min(int(tm), 8192))
    tm = (tm // row_align) * row_align

    rows_padded = _round_up(n_rows, row_align)
    tm = min(tm, rows_padded)

    num_tiles = _ceil_div(n_rows, tm)
    # Bias toward an even tile count so v7x's two TensorCores split the parallel
    # grid axis evenly (harmless on single-TC chips).
    if num_tiles > 1 and num_tiles % 2 == 1:
        tm_even = max(row_align, _round_up(_ceil_div(n_rows, num_tiles + 1), row_align))
        if tm_even <= tm:
            tm = tm_even
            num_tiles = _ceil_div(n_rows, tm)
    return tm, num_tiles, vmem_limit


def focal_loss(logits, targets, class_weights=None, *, gamma=0.0, ignore_index=0,
               tile_rows=None):
    """Pallas implementation of FocalLoss.forward.

    logits:  (B, T, V) float (f32 or bf16 -- streamed in its native dtype)
    targets: (B, T)    int
    returns: scalar loss (same dtype as logits)
    """
    B, T, V = logits.shape
    N = B * T
    x = logits.reshape(N, V)                     # native dtype, read once by the kernel
    t = targets.reshape(N).astype(jnp.int32)

    # Per-row class weight gathered outside the kernel (cheap N-length gather).
    if class_weights is None:
        w_row = jnp.ones((N,), dtype=jnp.float32)
    else:
        w_flat = class_weights.reshape(-1).astype(jnp.float32)
        w_row = jnp.take(w_flat, jnp.clip(t, 0, V - 1))   # ignored rows masked in-kernel

    itemsize = jnp.dtype(x.dtype).itemsize
    row_align = {4: 8, 2: 16, 1: 32}.get(itemsize, 8)

    n_valid_rows = N
    if N < row_align:                            # tiny-input fallback only
        pad = row_align - N
        x = jnp.pad(x, ((0, pad), (0, 0)))
        t = jnp.pad(t, (0, pad), constant_values=ignore_index)
        w_row = jnp.pad(w_row, (0, pad), constant_values=1.0)
        N = row_align

    # TODO(synk): if a single (row_align, V) logits block ever exceeds VMEM (V in the
    # millions), the class axis would need a two-pass LSE split; not implemented.
    tm, num_tiles, vmem_limit = _pick_tiling(N, V, itemsize, row_align, tile_rows)
    n_meta = num_tiles * tm

    # Lane-dense int32 metadata slab: lane 0 = target, lane 1 = f32 bits of w[target].
    w_bits = jax.lax.bitcast_convert_type(w_row, jnp.int32)
    meta = jnp.concatenate([t[:, None], w_bits[:, None]], axis=1)       # (N, 2)
    meta = jnp.pad(meta, ((0, n_meta - N), (0, _LANES - 2)))            # (n_meta, 128)

    kernel = functools.partial(_focal_loss_kernel,
                               gamma=float(gamma),
                               ignore_index=int(ignore_index),
                               n_rows=n_valid_rows,
                               tile_rows=tm)

    psums = pl.pallas_call(
        kernel,
        out_shape=jax.ShapeDtypeStruct((num_tiles, 1, _LANES), jnp.float32),
        grid_spec=pltpu.PrefetchScalarGridSpec(
            num_scalar_prefetch=0,
            grid=(num_tiles,),
            in_specs=[
                pl.BlockSpec((tm, V), lambda i: (i, 0)),        # logits rows (native dtype)
                pl.BlockSpec((tm, _LANES), lambda i: (i, 0)),   # per-row metadata slab
                # On v7x, pipeline_mode=pl.Buffered(3) on the logits spec could be
                # swept if a profile shows exposed DMA; left at the default here.
            ],
            out_specs=pl.BlockSpec((1, 1, _LANES), lambda i: (i, 0, 0)),
        ),
        compiler_params=pltpu.CompilerParams(
            dimension_semantics=("parallel",),
            vmem_limit_bytes=vmem_limit,
        ),
    )(x, meta)

    s = jnp.sum(psums[:, 0, 0])
    c = jnp.sum((targets.reshape(-1).astype(jnp.int32) != ignore_index)
                .astype(jnp.float32))
    out = jnp.where(c > 0, s / jnp.maximum(c, 1.0), jnp.float32(0.0))
    return out.astype(logits.dtype)


def _ref_focal_loss(logits, targets, class_weights, gamma, ignore_index):
    """Pure-JAX reference mirroring the PyTorch module."""
    B, T, V = logits.shape
    x = logits.reshape(-1, V).astype(jnp.float32)
    t = targets.reshape(-1).astype(jnp.int32)
    logp = jax.nn.log_softmax(x, axis=-1)
    nll = -jnp.take_along_axis(logp, t[:, None], axis=-1)[:, 0]
    w = (jnp.ones((V,), jnp.float32) if class_weights is None
         else class_weights.astype(jnp.float32))
    ce = w[t] * nll
    mask = t != ignore_index
    pt = jnp.exp(-ce)
    loss = (1.0 - pt) ** gamma * ce
    s = jnp.sum(jnp.where(mask, loss, 0.0))
    c = jnp.sum(mask.astype(jnp.float32))
    return jnp.where(c > 0, s / jnp.maximum(c, 1.0), 0.0).astype(logits.dtype)


if __name__ == "__main__":
    key = jax.random.PRNGKey(0)
    k1, k2, k3, k4 = jax.random.split(key, 4)

    ignore_index = 0

    # --- small base case: B=2, T=8, V=32 ---------------------------------------
    B, T, V = 2, 8, 32
    logits = jax.random.normal(k1, (B, T, V), dtype=jnp.float32)
    targets = jax.random.randint(k2, (B, T), 0, V, dtype=jnp.int32)
    class_weights = jnp.linspace(0.5, 1.5, V, dtype=jnp.float32)

    # gamma = 2 with class weights (integer-gamma fast path).
    out = focal_loss(logits, targets, class_weights, gamma=2.0, ignore_index=ignore_index)
    out = jax.block_until_ready(out)
    ref = _ref_focal_loss(logits, targets, class_weights, 2.0, ignore_index)
    assert jnp.allclose(out, ref, rtol=1e-5, atol=1e-5), (out, ref)

    # gamma = 0, no class weights (plain masked CE path).
    out0 = focal_loss(logits, targets, None, gamma=0.0, ignore_index=ignore_index)
    out0 = jax.block_until_ready(out0)
    ref0 = _ref_focal_loss(logits, targets, None, 0.0, ignore_index)
    assert jnp.allclose(out0, ref0, rtol=1e-5, atol=1e-5), (out0, ref0)

    # non-integer gamma (guarded pow fallback).
    out1 = focal_loss(logits, targets, class_weights, gamma=1.5, ignore_index=ignore_index)
    out1 = jax.block_until_ready(out1)
    ref1 = _ref_focal_loss(logits, targets, class_weights, 1.5, ignore_index)
    assert jnp.allclose(out1, ref1, rtol=1e-4, atol=1e-5), (out1, ref1)

    # bf16 logits (native-dtype max/gather path, f32 LSE) -- looser tolerance.
    logits_bf = logits.astype(jnp.bfloat16)
    outb = focal_loss(logits_bf, targets, class_weights, gamma=2.0, ignore_index=ignore_index)
    outb = jax.block_until_ready(outb)
    refb = _ref_focal_loss(logits_bf, targets, class_weights, 2.0, ignore_index)
    assert jnp.allclose(outb.astype(jnp.float32), refb.astype(jnp.float32),
                        rtol=2e-2, atol=2e-2), (outb, refb)

    # ragged multi-tile case (N=148, V=160, forced tile_rows -> even-tile bias).
    B2, T2, V2 = 4, 37, 160
    logits2 = jax.random.normal(k3, (B2, T2, V2), dtype=jnp.float32)
    targets2 = jax.random.randint(k4, (B2, T2), 0, V2, dtype=jnp.int32)
    cw2 = jnp.linspace(0.5, 1.5, V2, dtype=jnp.float32)
    out2 = focal_loss(logits2, targets2, cw2, gamma=2.0, ignore_index=ignore_index,
                      tile_rows=64)
    out2 = jax.block_until_ready(out2)
    ref2 = _ref_focal_loss(logits2, targets2, cw2, 2.0, ignore_index)
    assert jnp.allclose(out2, ref2, rtol=1e-5, atol=1e-5), (out2, ref2)

    print("KERNEL_OK")
</pallas_src>

<mosaic_0001>
module attributes {stable_mosaic.version = 11 : i64} {
  func.func @_focal_loss_kernel(%arg0: i32, %arg1: memref<16x32xf32, #tpu.memory_space<vmem>>, %arg2: memref<16x128xi32, #tpu.memory_space<vmem>>, %arg3: memref<1x1x128xf32, #tpu.memory_space<vmem>>) attributes {dimension_semantics = [#tpu.dimension_semantics<parallel>], iteration_bounds = array<i64: 1>, scalar_prefetch = 0 : i64, scratch_operands = 0 : i64, tpu.core_type = #tpu.core_type<tc>, window_params = [{transform_indices = @transform_0, window_bounds = array<i64: 16, 32>}, {transform_indices = @transform_1, window_bounds = array<i64: 16, 128>}, {transform_indices = @transform_2, window_bounds = array<i64: 1, 1, 128>}]} {
    %c0 = arith.constant 0 : index
    %c0_0 = arith.constant 0 : index
    %0 = vector.load %arg1[%c0, %c0_0] : memref<16x32xf32, #tpu.memory_space<vmem>>, vector<16x32xf32>
    %c0_1 = arith.constant 0 : index
    %c0_2 = arith.constant 0 : index
    %1 = vector.load %arg2[%c0_1, %c0_2] : memref<16x128xi32, #tpu.memory_space<vmem>>, vector<16x1xi32>
    %c0_3 = arith.constant 0 : index
    %c1 = arith.constant 1 : index
    %2 = vector.load %arg2[%c0_3, %c1] : memref<16x128xi32, #tpu.memory_space<vmem>>, vector<16x1xi32>
    %3 = tpu.bitcast %2 : vector<16x1xi32> -> vector<16x1xf32>
    %cst = arith.constant dense<0xFF800000> : vector<16xf32>
    %4 = vector.multi_reduction <maximumf>, %0, %cst [1] : vector<16x32xf32> to vector<16xf32>
    %5 = vector.shape_cast %4 : vector<16xf32> to vector<16x1xf32>
    %6 = tpu.iota {dimensions = array<i32: 1>} : vector<1x32xi32>
    %7 = vector.broadcast %6 : vector<1x32xi32> to vector<16x32xi32>
    %8 = vector.broadcast %1 : vector<16x1xi32> to vector<16x32xi32>
    %9 = arith.cmpi eq, %7, %8 : vector<16x32xi32>
    %c0_i32 = arith.constant 0 : i32
    %10 = arith.sitofp %c0_i32 : i32 to f32
    %11 = vector.broadcast %10 : f32 to vector<16x32xf32>
    %12 = arith.select %9, %0, %11 : vector<16x32xi1>, vector<16x32xf32>
    %cst_4 = arith.constant dense<0.000000e+00> : vector<16xf32>
    %13 = vector.multi_reduction <add>, %12, %cst_4 [1] : vector<16x32xf32> to vector<16xf32>
    %14 = vector.shape_cast %13 : vector<16xf32> to vector<16x1xf32>
    %15 = vector.broadcast %5 : vector<16x1xf32> to vector<16x32xf32>
    %16 = arith.subf %0, %15 : vector<16x32xf32>
    %17 = math.exp %16 : vector<16x32xf32>
    %cst_5 = arith.constant dense<0.000000e+00> : vector<16xf32>
    %18 = vector.multi_reduction <add>, %17, %cst_5 [1] : vector<16x32xf32> to vector<16xf32>
    %19 = vector.shape_cast %18 : vector<16xf32> to vector<16x1xf32>
    %20 = math.log %19 : vector<16x1xf32>
    %21 = arith.addf %5, %20 : vector<16x1xf32>
    %22 = arith.subf %21, %14 : vector<16x1xf32>
    %23 = arith.mulf %3, %22 : vector<16x1xf32>
    %24 = tpu.iota {dimensions = array<i32: 0>} : vector<16x1xi32>
    %c16_i32 = arith.constant 16 : i32
    %25 = arith.muli %arg0, %c16_i32 : i32
    %26 = vector.broadcast %25 : i32 to vector<16x1xi32>
    %27 = arith.addi %26, %24 : vector<16x1xi32>
    %c16_i32_6 = arith.constant 16 : i32
    %28 = vector.broadcast %c16_i32_6 : i32 to vector<16x1xi32>
    %29 = arith.cmpi slt, %27, %28 : vector<16x1xi32>
    %c0_i32_7 = arith.constant 0 : i32
    %30 = vector.broadcast %c0_i32_7 : i32 to vector<16x1xi32>
    %31 = arith.cmpi ne, %1, %30 : vector<16x1xi32>
    %32 = arith.andi %31, %29 : vector<16x1xi1>
    %cst_8 = arith.constant 0.000000e+00 : f32
    %33 = vector.broadcast %cst_8 : f32 to vector<16x1xf32>
    %34 = arith.subf %33, %23 : vector<16x1xf32>
    %35 = math.exp %34 : vector<16x1xf32>
    %cst_9 = arith.constant 1.000000e+00 : f32
    %36 = vector.broadcast %cst_9 : f32 to vector<16x1xf32>
    %37 = arith.subf %36, %35 : vector<16x1xf32>
    %cst_10 = arith.constant 0.000000e+00 : f32
    %38 = vector.broadcast %cst_10 : f32 to vector<16x1xf32>
    %39 = arith.maximumf %37, %38 : vector<16x1xf32>
    %40 = arith.mulf %39, %39 : vector<16x1xf32>
    %41 = arith.mulf %40, %23 : vector<16x1xf32>
    %cst_11 = arith.constant 0.000000e+00 : f32
    %42 = vector.broadcast %cst_11 : f32 to vector<16x1xf32>
    %43 = arith.select %32, %41, %42 : vector<16x1xi1>, vector<16x1xf32>
    %44 = vector.shape_cast %43 : vector<16x1xf32> to vector<1x16x1xf32>
    %cst_12 = arith.constant dense<0.000000e+00> : vector<1xf32>
    %45 = vector.multi_reduction <add>, %44, %cst_12 [1, 2] : vector<1x16x1xf32> to vector<1xf32>
    %46 = vector.shape_cast %45 : vector<1xf32> to vector<1x1x1xf32>
    %47 = vector.extract %46[0, 0, 0] : f32 from vector<1x1x1xf32>
    %48 = vector.broadcast %47 : f32 to vector<1x1xf32>
    %49 = vector.shape_cast %48 : vector<1x1xf32> to vector<1x1x1xf32>
    %50 = vector.shape_cast %49 : vector<1x1x1xf32> to vector<1x1x1xf32>
    %51 = vector.broadcast %50 : vector<1x1x1xf32> to vector<1x1x128xf32>
    %c0_13 = arith.constant 0 : index
    %c0_14 = arith.constant 0 : index
    %c0_15 = arith.constant 0 : index
    %52 = vector.load %arg3[%c0_13, %c0_14, %c0_15] : memref<1x1x128xf32, #tpu.memory_space<vmem>>, vector<1x1x128xf32>
    tpu.vector_store %arg3[%c0_13, %c0_14, %c0_15], %51 {strides = array<i32>} : memref<1x1x128xf32, #tpu.memory_space<vmem>>, vector<1x1x128xf32>,
    return
  }
  func.func @transform_0(%arg0: i32) -> (i32, i32) {
    %c0_i32 = arith.constant 0 : i32
    %c0_i32_0 = arith.constant 0 : i32
    return %arg0, %c0_i32 : i32, i32
  }
  func.func @transform_1(%arg0: i32) -> (i32, i32) {
    %c0_i32 = arith.constant 0 : i32
    %c0_i32_0 = arith.constant 0 : i32
    return %arg0, %c0_i32 : i32, i32
  }
  func.func @transform_2(%arg0: i32) -> (i32, i32, i32) {
    %c0_i32 = arith.constant 0 : i32
    %c0_i32_0 = arith.constant 0 : i32
    %c0_i32_1 = arith.constant 0 : i32
    return %arg0, %c0_i32, %c0_i32_0 : i32, i32, i32
  }
}

</mosaic_0001>

<bundles_post_ra>
// kernel: tpu_custom_call.1
= control target key start
LH: loop header
LB: loop body
LE: loop exit
PB: predicated region body
PF: predicated region fallthrough
CT: control target
= control target key end

     0   :  { %7 = vsyncpa [#allocation3], 0  ;;  %s297_s0 = inlined_call_operand.hbm [shape: f32[16,32], index: 0, kind: input, shape index: {}]   ;;  %s298_s1 = inlined_call_operand.hbm [shape: s32[16,128], index: 1, kind: input, shape index: {}]   ;;  %s299_s2 = inlined_call_operand.hbm [shape: f32[1,1,128], index: 2, kind: output, shape index: {}]  }
   0x1   :  { %8 = vsyncpa [#allocation6], 0 }
   0x2   :  { %9 = vsyncpa [#allocation4], 0  ;;  %s250_s9 = smov [#allocation2]  }
   0x3   :  { %s15_s10 = sshll.u32 %s250_s9, 4  ;;  %s16_s10 = int_to_ptr.vmem [resolvable:$true] %s15_s10 }
   0x4   :  { %s192_s11 = scalar_lea.vmem %s16_s10, 256  ;;  %p197_p1 = scmp.lt.s32.totalorder %s16_s10, %s16_s10 }
   0x5   :  { %p193_p0 = scmp.ne.s32.totalorder %s16_s10, %s192_s11  ;;  %p198_p2 = scmp.lt.s32.totalorder %s192_s11, %s192_s11 }
   0x7   :  { %p199_p3 = por %p198_p2, %p197_p1 }
   0x9   :  { %p200_p4 = pnand %p199_p3, %p193_p0 }
   0xb   :  { %203 = shalt.err (!%p200_p4)
}
   0xc   :  { %s251_s12 = smov 128   ;;  %s252_s13 = smov 8  }
   0xd   :  { %21 = dma.hbm_to_vmem [thread:$0]  %s297_s0, 256, %s16_s10, [#allocation3], %s251_s12, %s251_s12, %s252_s13  }
   0xe   :  { %s253_s16 = smov [#allocation5]  }
   0xf   :  { %s27_s17 = sshll.u32 %s253_s16, 4  ;;  %s28_s17 = int_to_ptr.vmem [resolvable:$true] %s27_s17 }
  0x10   :  { %s212_s18 = scalar_lea.vmem %s28_s17, 256  ;;  %p217_p6 = scmp.lt.s32.totalorder %s28_s17, %s28_s17 }
  0x11   :  { %p213_p5 = scmp.ne.s32.totalorder %s28_s17, %s212_s18  ;;  %p218_p7 = scmp.lt.s32.totalorder %s212_s18, %s212_s18 }
  0x13   :  { %p219_p8 = por %p218_p7, %p217_p6 }
  0x15   :  { %p220_p9 = pnand %p219_p8, %p213_p5 }
  0x17   :  { %223 = shalt.err (!%p220_p9)
}
  0x18   :  { %33 = dma.hbm_to_vmem [thread:$0]  %s298_s1, 256, %s28_s17, [#allocation6], %s251_s12, %s251_s12, %s252_s13  }
  0x19   :  { %244 = dma.done.wait [#allocation3], 256  }
  0x1a   :  { %245 = vsyncadd [#allocation3], 4294967040 }
  0x1b   :  { %246 = dma.done.wait [#allocation6], 256  }
  0x1c   :  { %247 = vsyncadd [#allocation6], 4294967040  ;;  %v254_v0 = vmov 0   ;;  %vm46_vm0 = vcmask 261120   ;;  %v40_v1 = vld [vmem:[#allocation2] sm:$0xff]  ;;  %v41_v2 = vld [vmem:[#allocation2 + $0x8] sm:$0xff]  ;;  %v53_v13 = vlaneseq }
  0x1d   :  { %170 = vset.pattern.permute.xlu1 %v254_v0  ;;  %171 = vset.pattern.permute.xlu0 %v254_v0  ;;  %v278_v3 = vld [vmem:[#allocation5] sm:$0xff]  ;;  %v47_v4 = vsel %vm46_vm0, %v40_v1, -inf  ;;  %v282_v5 = vld [vmem:[#allocation5 + $0x8] sm:$0xff]  ;;  %v50_v6 = vsel %vm46_vm0, %v41_v2, -inf  ;;  %s255_s0 = smov 127   ;;  %vm130_vm5 = vcmask 7168  }
  0x1e   :  { %56 = vperm.xlu1 %170, %v278_v3   ;;  %48 = vmax.xlane.f32.xlu0 %v47_v4  ;;  %v54_v15 = vand.u32 127, %v53_v13  ;;  %vm102_vm3 = vcmp.ne.s32.totalorder %v278_v3, 0  ;;  %vm103_vm4 = vcmp.ne.s32.totalorder %v282_v5, 0  ;;  %s256_s1 = smov [#allocation7]  }
  0x1f   :  { %s151_s21 = sshll.u32 %s256_s1, 4  ;;  %s152_s21 = int_to_ptr.vmem [resolvable:$true] %s151_s21 }
  0x20   :  { %s224_s23 = scalar_lea.vmem %s152_s21, 16  ;;  %s228_s24 = scalar_lea.vmem %s152_s21, 32 }
  0x21   :  { %p225_p10 = scmp.ne.s32.totalorder %s152_s21, %s224_s23  ;;  %p229_p11 = scmp.lt.s32.totalorder %s152_s21, %s152_s21 }
  0x22   :  { %59 = vperm.xlu1 %170, %v282_v5   ;;  %51 = vmax.xlane.f32.xlu0 %v50_v6  ;;  %p230_p12 = scmp.lt.s32.totalorder %s228_s24, %s224_s23 }
  0x24   :  { %p231_p13 = por %p230_p12, %p229_p11 }
  0x26   :  { %p232_p0 = pnand %p231_p13, %p225_p10 }
  0x99   :  { %v57_v14 = vpop.permute.xlu1 %56 }
  0x9a   :  { %vm61_vm1 = vcmp.eq.s32.totalorder %v54_v15, %v57_v14 }
  0x9b   :  { %v63_v18 = vsel %vm61_vm1, %v40_v1, 0.0 }
  0x9c   :  { %v65_v20 = vsel %vm46_vm0, %v63_v18, 0.0 }
  0x9d   :  { %v60_v16 = vpop.permute.xlu1 %59 }
  0x9e   :  { %vm62_vm2 = vcmp.eq.s32.totalorder %v54_v15, %v60_v16 }
  0x9f   :  { %v64_v22 = vsel %vm62_vm2, %v41_v2, 0.0 }
  0xa0   :  { %v68_v24 = vsel %vm46_vm0, %v64_v22, 0.0 }
  0xa7   :  { %v49_v7 = vpop.xlane.xlu0 %48 }
  0xa8   :  { %v71_v8 = vsub.f32 %v40_v1, %v49_v7 }
  0xaa   :  { %v73_v9 = vmul.f32 1.442695, %v71_v8 }
  0xab   :  { %v52_v10 = vpop.xlane.xlu0 %51 }
  0xac   :  { %172 = vpow2.f32 %v73_v9  ;;  %v72_v11 = vsub.f32 %v41_v2, %v52_v10 }
  0xae   :  { %v75_v12 = vmul.f32 1.442695, %v72_v11 }
  0xb0   :  { %174 = vpow2.f32 %v75_v12 }
  0xb9   :  { %v173_v17 = vpop.eup %172 }
  0xba   :  { %v77_v19 = vsel %vm46_vm0, %v173_v17, 0.0 }
  0xbb   :  { %78 = vadd.xlane.f32.xlu0 %v77_v19 }
  0xbd   :  { %v175_v21 = vpop.eup %174 }
  0xbe   :  { %v80_v23 = vsel %vm46_vm0, %v175_v21, 0.0 }
  0xbf   :  { %81 = vadd.xlane.f32.xlu1 %v80_v23  ;;  %66 = vadd.xlane.f32.xlu0 %v65_v20 }
  0xc3   :  { %69 = vadd.xlane.f32.xlu0 %v68_v24 }
 0x144   :  { %v79_v25 = vpop.xlane.xlu0 %78 }
 0x145   :  { %176 = vlog2.f32 %v79_v25 }
 0x148   :  { %v82_v26 = vpop.xlane.xlu1 %81  ;;  %v67_v29 = vpop.xlane.xlu0 %66 }
 0x149   :  { %178 = vlog2.f32 %v82_v26 }
 0x14c   :  { %v70_v36 = vpop.xlane.xlu0 %69 }
 0x152   :  { %v177_v27 = vpop.eup %176 }
 0x153   :  { %v84_v28 = vmul.f32 0.6931472, %v177_v27 }
 0x155   :  { %v87_v30 = vadd.f32 %v84_v28, %v49_v7 }
 0x156   :  { %v179_v31 = vpop.eup %178 }
 0x157   :  { %v86_v32 = vmul.f32 0.6931472, %v179_v31  ;;  %v89_v33 = vsub.f32 %v87_v30, %v67_v29 }
 0x159   :  { %v91_v34 = vmul.f32 %v89_v33, %v278_v3  ;;  %v88_v35 = vadd.f32 %v86_v32, %v52_v10 }
 0x15b   :  { %v106_v37 = vsub.f32 0.0, %v91_v34  ;;  %v90_v38 = vsub.f32 %v88_v35, %v70_v36 }
 0x15d   :  { %v108_v39 = vmul.f32 1.442695, %v106_v37  ;;  %v92_v40 = vmul.f32 %v90_v38, %v282_v5 }
 0x15f   :  { %180 = vpow2.f32 %v108_v39  ;;  %v107_v41 = vsub.f32 0.0, %v92_v40 }
 0x161   :  { %v110_v42 = vmul.f32 1.442695, %v107_v41 }
 0x163   :  { %182 = vpow2.f32 %v110_v42 }
 0x16c   :  { %v181_v43 = vpop.eup %180 }
 0x16d   :  { %v112_v44 = vsub.f32 1.0, %v181_v43 }
 0x16f   :  { %v114_v45 = vmax.f32 %v112_v44, 0.0 }
 0x170   :  { %v183_v46 = vpop.eup %182 }
 0x171   :  { %v116_v47 = vmul.f32 %v114_v45, %v114_v45  ;;  %v113_v48 = vsub.f32 1.0, %v183_v46 }
 0x173   :  { %v118_v49 = vmul.f32 %v116_v47, %v91_v34  ;;  %v115_v50 = vmax.f32 %v113_v48, 0.0 }
 0x175   :  { %122 = vrot.lane.b32.xlu0 %v118_v49, %s255_s0  ;;  %v117_v51 = vmul.f32 %v115_v50, %v115_v50 }
 0x177   :  { %v119_v52 = vmul.f32 %v117_v51, %v92_v40 }
 0x179   :  { %124 = vrot.lane.b32.xlu0 %v119_v52, %s255_s0 }
 0x1e7   :  { %v123_v53 = vpop.permute.xlu0 %122 }
 0x1e8   :  { %v128_v54 = vsel %vm102_vm3, %v123_v53, 0.0 }
 0x1e9   :  { %v131_v57 = vsel %vm130_vm5, %v128_v54, 0.0 }
 0x1eb   :  { %v125_v55 = vpop.permute.xlu0 %124 }
 0x1ec   :  { %v129_v56 = vsel %vm103_vm4, %v125_v55, 0.0 }
 0x1ed   :  { %v132_v58 = vsel %vm130_vm5, %v129_v56, 0.0 }
 0x1ee   :  { %v133_v59 = vadd.f32 %v132_v58, %v131_v57 }
 0x1f0   :  { %134 = vadd.xlane.f32.xlu1 %v133_v59 }
 0x279   :  { %v135_v60 = vpop.xlane.xlu1 %134 }
 0x27a   :  { %v136_v61 = vrot.slane %v135_v60, 4 }
 0x27c   :  { %v137_v62 = vadd.f32 %v136_v61, %v135_v60 }
 0x27e   :  { %v138_v63 = vrot.slane %v137_v62, 2 }
 0x280   :  { %v139_v0 = vadd.f32 %v138_v63, %v137_v62 }
 0x282   :  { %v140_v1 = vrot.slane %v139_v0, 1 }
 0x284   :  { %v141_v2 = vadd.f32 %v140_v1, %v139_v0 }
 0x286   :  { %161 = vpush %v141_v2 }
 0x2b7   :  { %s162_s22 = spop %161 }
 0x2b8   :  { %v143_v3 = vstv %s162_s22 }
 0x2b9   :  { %144 = vst [vmem:[#allocation7] sm:$0x1] %v143_v3 }
 0x2ba   :  { %235 = shalt.err (!%p232_p0)
}
 0x2bb   :  { %154 = dma.vmem_to_hbm [thread:$0]  %s152_s21, 16, %s299_s2, [#allocation4]  }
 0x2bc   :  { %248 = dma.done.wait [#allocation4], 16  }
 0x2bd   :  { %249 = vsyncadd [#allocation4], 4294967280 }
 0x2be   :  { %158 = vsyncpa [#allocation3], 1 }
 0x2bf   :  { %159 = vsyncpa [#allocation6], 1 }
 0x2c0   :  { %160 = vsyncpa [#allocation4], 1 }

</bundles_post_ra>
